<compile_context>
chip_gen: v5e
topology: v5e:2x2
jax: 0.10.0
libtpu: 0.0.40
codegen_flags: <defaults>
</compile_context>

<pallas_src>
from functools import partial

import jax
import jax.numpy as jnp
from jax import lax
from jax.experimental import pallas as pl
from jax.experimental.pallas import tpu as pltpu


# ---------------------------------------------------------------------------
# Kernel 1: fused QKV projection (three 1x1 convs == one per-pixel matmul).
# ---------------------------------------------------------------------------
def pam_proj_kernel(x_ref, w_ref, b_ref, q_ref, k_ref, v_ref):
    x = x_ref[...]                                                    # (tr, C) bf16
    # Single lane-dense matmul against the concatenated (C, 2*Cp + C) weight.
    qkv = jnp.dot(x, w_ref[...], preferred_element_type=jnp.float32) + b_ref[...]
    cp = q_ref.shape[-1]                      # padded q/k width (multiple of 128)
    q_ref[...] = qkv[:, :cp].astype(q_ref.dtype)
    k_ref[...] = qkv[:, cp:2 * cp].astype(k_ref.dtype)
    v_ref[...] = qkv[:, 2 * cp:].astype(v_ref.dtype)


# ---------------------------------------------------------------------------
# Kernel 2: flash-style position attention + gamma residual.
#   energy[i, j] = <q_i, k_j>, softmax over j, out = gamma * (attn @ v) + x
#   K/V refs hold the FULL per-batch slab (resident in VMEM); the kv sweep is
#   an in-kernel fori_loop over tk-sized slices.
# ---------------------------------------------------------------------------
def pam_attn_kernel(q_ref, k_ref, v_ref, x_ref, gamma_ref, o_ref, *, tk):
    q = q_ref[...]                                                    # (tq, Cp) bf16
    tq = q.shape[0]
    c = v_ref.shape[-1]
    n_kv = k_ref.shape[0] // tk

    def body(j, carry):
        m_prev, l_prev, acc_prev = carry
        off = pl.multiple_of(j * tk, tk)
        k = k_ref[pl.ds(off, tk), :]                                  # (tk, Cp) bf16
        v = v_ref[pl.ds(off, tk), :]                                  # (tk, C)  bf16
        # Contract the last axes directly (MXU-native, no XLU transpose of k).
        s = lax.dot_general(q, k, dimension_numbers=(((1,), (1,)), ((), ())),
                            preferred_element_type=jnp.float32)      # (tq, tk) f32
        m_new = jnp.maximum(m_prev, jnp.max(s, axis=-1, keepdims=True))
        alpha = jnp.exp(m_prev - m_new)                               # f32
        p = jnp.exp(s - m_new)                                        # (tq, tk) f32
        l_new = alpha * l_prev + jnp.sum(p, axis=-1, keepdims=True)
        acc_new = alpha * acc_prev + jnp.dot(
            p.astype(v.dtype), v, preferred_element_type=jnp.float32)
        return m_new, l_new, acc_new

    m0 = jnp.full((tq, 1), -jnp.inf, dtype=jnp.float32)
    l0 = jnp.zeros((tq, 1), dtype=jnp.float32)
    acc0 = jnp.zeros((tq, c), dtype=jnp.float32)
    _, l_fin, acc_fin = lax.fori_loop(0, n_kv, body, (m0, l0, acc0))

    gamma = gamma_ref[0]                                              # SMEM scalar
    inv_l = pl.reciprocal(l_fin, approx=True)
    out = gamma * (acc_fin * inv_l) + x_ref[...].astype(jnp.float32)
    o_ref[...] = out.astype(o_ref.dtype)


# ---------------------------------------------------------------------------
# Wrapper
# ---------------------------------------------------------------------------
def _pick_tile(n, pref):
    """Largest tile <= pref dividing n; prefer multiples of 128, then 16, then 8."""
    if n <= pref:
        return n
    for align in (128, 16, 8):
        t = (pref // align) * align
        while t >= align:
            if n % t == 0:
                return t
            t -= align
    # TODO(synk): awkward N with no aligned divisor falls back to a full-size
    # tile; acceptable for H*W spatial sizes which are highly composite.
    return n


def pam_forward(x_nchw, wq, bq, wk, bk, wv, bv, gamma, *, tq=512, tk=512, tr=1024):
    """x_nchw: (B, C, H, W). Weights stored as (C_in, C_out); biases (1, C_out)."""
    B, C, H, W = x_nchw.shape
    N = H * W
    C8 = wq.shape[1]
    # Pad q/k channel width up to a multiple of 128 (exact: zero channels).
    cp = ((C8 + 127) // 128) * 128
    cout = 2 * cp + C

    # Glue: NCHW -> (B, N, C) in bf16 (single fused transpose+convert pass).
    x_bnc = jnp.transpose(x_nchw.reshape(B, C, N), (0, 2, 1)).astype(jnp.bfloat16)

    # Fused, padded projection weights / biases.
    wq_p = jnp.pad(wq, ((0, 0), (0, cp - C8)))
    wk_p = jnp.pad(wk, ((0, 0), (0, cp - C8)))
    bq_p = jnp.pad(bq, ((0, 0), (0, cp - C8)))
    bk_p = jnp.pad(bk, ((0, 0), (0, cp - C8)))
    w_qkv = jnp.concatenate([wq_p, wk_p, wv], axis=1).astype(jnp.bfloat16)  # (C, cout)
    b_qkv = jnp.concatenate([bq_p, bk_p, bv], axis=1).astype(jnp.float32)   # (1, cout)

    tr = _pick_tile(N, tr)
    tq = _pick_tile(N, tq)
    tk = _pick_tile(N, tk)
    vmem_limit = 64 * 1024 * 1024   # explicit budget (<= v7x physical 64 MiB)

    # ---- Pass 1: projection (q, k padded to cp; all bf16) ----
    proj_cost = pl.CostEstimate(
        flops=2 * B * N * C * cout,
        transcendentals=0,
        bytes_accessed=2 * B * N * C + 2 * C * cout + 4 * cout + 2 * B * N * cout)
    q, k, v = pl.pallas_call(
        pam_proj_kernel,
        out_shape=(jax.ShapeDtypeStruct((B, N, cp), jnp.bfloat16),
                   jax.ShapeDtypeStruct((B, N, cp), jnp.bfloat16),
                   jax.ShapeDtypeStruct((B, N, C), jnp.bfloat16)),
        grid=(B, N // tr),
        in_specs=[
            pl.BlockSpec((None, tr, C), lambda b, i: (b, i, 0)),    # x tile
            pl.BlockSpec((C, cout), lambda b, i: (0, 0)),           # fused weight
            pl.BlockSpec((1, cout), lambda b, i: (0, 0)),           # fused bias
        ],
        out_specs=(
            pl.BlockSpec((None, tr, cp), lambda b, i: (b, i, 0)),
            pl.BlockSpec((None, tr, cp), lambda b, i: (b, i, 0)),
            pl.BlockSpec((None, tr, C), lambda b, i: (b, i, 0)),
        ),
        compiler_params=pltpu.CompilerParams(
            dimension_semantics=("parallel", "parallel"),
            vmem_limit_bytes=vmem_limit),
        cost_estimate=proj_cost,
    )(x_bnc, w_qkv, b_qkv)

    gamma1 = jnp.reshape(gamma, (1,)).astype(jnp.float32)

    # ---- Pass 2: flash attention with resident per-batch K/V ----
    attn_cost = pl.CostEstimate(
        flops=2 * B * N * N * (cp + C),
        transcendentals=B * N * N,
        bytes_accessed=B * N * (4 * cp + 6 * C) + 4)
    out_bnc = pl.pallas_call(
        partial(pam_attn_kernel, tk=tk),
        out_shape=jax.ShapeDtypeStruct((B, N, C), jnp.bfloat16),
        grid=(B, N // tq),
        in_specs=[
            pl.BlockSpec((None, tq, cp), lambda b, i: (b, i, 0)),   # q tile
            pl.BlockSpec((None, N, cp), lambda b, i: (b, 0, 0)),    # K resident/batch
            pl.BlockSpec((None, N, C), lambda b, i: (b, 0, 0)),     # V resident/batch
            pl.BlockSpec((None, tq, C), lambda b, i: (b, i, 0)),    # x (residual)
            pl.BlockSpec(memory_space=pltpu.MemorySpace.SMEM),      # gamma scalar
        ],
        out_specs=pl.BlockSpec((None, tq, C), lambda b, i: (b, i, 0)),
        compiler_params=pltpu.CompilerParams(
            dimension_semantics=("parallel", "parallel"),
            vmem_limit_bytes=vmem_limit),
        cost_estimate=attn_cost,
    )(q, k, v, x_bnc, gamma1)

    # (B, N, C) bf16 -> NCHW in the caller's dtype (fused transpose+convert).
    return jnp.transpose(out_bnc, (0, 2, 1)).reshape(B, C, H, W).astype(x_nchw.dtype)


# ---------------------------------------------------------------------------
# Pure-JAX f32 reference mirroring the PyTorch forward (for validation).
# ---------------------------------------------------------------------------
def pam_reference(x_nchw, wq, bq, wk, bk, wv, bv, gamma):
    B, C, H, W = x_nchw.shape
    N = H * W
    x_flat = jnp.transpose(x_nchw.reshape(B, C, N), (0, 2, 1))          # (B, N, C)
    q = x_flat @ wq + bq                                                 # (B, N, C8)
    k = x_flat @ wk + bk                                                 # (B, N, C8)
    v = x_flat @ wv + bv                                                 # (B, N, C)
    energy = jnp.einsum('bnc,bmc->bnm', q, k)                            # (B, N, N)
    attention = jax.nn.softmax(energy, axis=-1)
    out = jnp.einsum('bnm,bmc->bnc', attention, v)                       # (B, N, C)
    out = gamma * out + x_flat
    return jnp.transpose(out, (0, 2, 1)).reshape(B, C, H, W)


if __name__ == "__main__":
    # Small, valid shapes: in_dim must be >= 8 so in_dim // 8 >= 1.
    B, C, H, W = 2, 16, 8, 8
    C8 = C // 8

    key = jax.random.PRNGKey(0)
    kx, kq, kbq, kk, kbk, kv_, kbv = jax.random.split(key, 7)

    x = jax.random.normal(kx, (B, C, H, W), dtype=jnp.float32)

    # PyTorch conv weights are (out, in, 1, 1); stored pre-transposed as (in, out).
    wq = jax.random.normal(kq, (C, C8), dtype=jnp.float32) * 0.1
    bq = jax.random.normal(kbq, (1, C8), dtype=jnp.float32) * 0.1
    wk = jax.random.normal(kk, (C, C8), dtype=jnp.float32) * 0.1
    bk = jax.random.normal(kbk, (1, C8), dtype=jnp.float32) * 0.1
    wv = jax.random.normal(kv_, (C, C), dtype=jnp.float32) * 0.1
    bv = jax.random.normal(kbv, (1, C), dtype=jnp.float32) * 0.1
    # PyTorch init is gamma=0 (output == x); use a nonzero value so the
    # attention path is actually exercised.
    gamma = jnp.float32(0.5)

    out = pam_forward(x, wq, bq, wk, bk, wv, bv, gamma)
    out = jax.block_until_ready(out)

    ref = pam_reference(x, wq, bq, wk, bk, wv, bv, gamma)
    assert out.shape == (B, C, H, W)
    # bf16 MXU operands + bf16 activation/residual/output storage -> bf16 tolerance.
    assert jnp.allclose(out, ref, atol=2e-2, rtol=2e-2), "mismatch vs reference"

    print("KERNEL_OK")
</pallas_src>

<mosaic_0001>
module attributes {stable_mosaic.version = 11 : i64} {
  func.func @pam_proj_kernel(%arg0: i32, %arg1: i32, %arg2: memref<1x64x16xbf16, #tpu.memory_space<vmem>>, %arg3: memref<16x272xbf16, #tpu.memory_space<vmem>>, %arg4: memref<1x272xf32, #tpu.memory_space<vmem>>, %arg5: memref<1x64x128xbf16, #tpu.memory_space<vmem>>, %arg6: memref<1x64x128xbf16, #tpu.memory_space<vmem>>, %arg7: memref<1x64x16xbf16, #tpu.memory_space<vmem>>) attributes {dimension_semantics = [#tpu.dimension_semantics<parallel>, #tpu.dimension_semantics<parallel>], iteration_bounds = array<i64: 2, 1>, scalar_prefetch = 0 : i64, scratch_operands = 0 : i64, tpu.core_type = #tpu.core_type<tc>, window_params = [{transform_indices = @transform_0, window_bounds = array<i64: 1, 64, 16>}, {pipeline_mode = #tpu.pipeline_mode<synchronous>, transform_indices = @transform_1, window_bounds = array<i64: 16, 272>}, {pipeline_mode = #tpu.pipeline_mode<synchronous>, transform_indices = @transform_2, window_bounds = array<i64: 1, 272>}, {transform_indices = @transform_3, window_bounds = array<i64: 1, 64, 128>}, {transform_indices = @transform_4, window_bounds = array<i64: 1, 64, 128>}, {transform_indices = @transform_5, window_bounds = array<i64: 1, 64, 16>}]} {
    %c0 = arith.constant 0 : index
    %c0_0 = arith.constant 0 : index
    %c0_1 = arith.constant 0 : index
    %0 = vector.load %arg2[%c0, %c0_0, %c0_1] : memref<1x64x16xbf16, #tpu.memory_space<vmem>>, vector<1x64x16xbf16>
    %1 = vector.shape_cast %0 : vector<1x64x16xbf16> to vector<64x16xbf16>
    %c0_2 = arith.constant 0 : index
    %c0_3 = arith.constant 0 : index
    %2 = vector.load %arg3[%c0_2, %c0_3] : memref<16x272xbf16, #tpu.memory_space<vmem>>, vector<16x272xbf16>
    %cst = arith.constant dense<0.000000e+00> : vector<64x272xf32>
    %3 = tpu.matmul %1, %2, %cst {dimension_numbers = #tpu.dot_dimension_numbers<[1], [0], [0], [1], [0, 0, 1, 1], [], []>} : vector<64x16xbf16>, vector<16x272xbf16>, vector<64x272xf32> -> vector<64x272xf32>
    %c0_4 = arith.constant 0 : index
    %c0_5 = arith.constant 0 : index
    %4 = vector.load %arg4[%c0_4, %c0_5] : memref<1x272xf32, #tpu.memory_space<vmem>>, vector<1x272xf32>
    %5 = vector.broadcast %4 : vector<1x272xf32> to vector<64x272xf32>
    %6 = arith.addf %3, %5 : vector<64x272xf32>
    %7 = vector.extract_strided_slice %6 {offsets = [0, 0], sizes = [64, 128], strides = [1, 1]} : vector<64x272xf32> to vector<64x128xf32>
    %8 = arith.truncf %7 : vector<64x128xf32> to vector<64x128xbf16>
    %c0_6 = arith.constant 0 : index
    %c0_7 = arith.constant 0 : index
    %c0_8 = arith.constant 0 : index
    %9 = vector.load %arg5[%c0_6, %c0_7, %c0_8] : memref<1x64x128xbf16, #tpu.memory_space<vmem>>, vector<1x64x128xbf16>
    %10 = vector.shape_cast %9 : vector<1x64x128xbf16> to vector<64x128xbf16>
    %11 = vector.shape_cast %8 : vector<64x128xbf16> to vector<1x64x128xbf16>
    tpu.vector_store %arg5[%c0_6, %c0_7, %c0_8], %11 {strides = array<i32>} : memref<1x64x128xbf16, #tpu.memory_space<vmem>>, vector<1x64x128xbf16>,
    %12 = vector.extract_strided_slice %6 {offsets = [0, 128], sizes = [64, 128], strides = [1, 1]} : vector<64x272xf32> to vector<64x128xf32>
    %13 = arith.truncf %12 : vector<64x128xf32> to vector<64x128xbf16>
    %c0_9 = arith.constant 0 : index
    %c0_10 = arith.constant 0 : index
    %c0_11 = arith.constant 0 : index
    %14 = vector.load %arg6[%c0_9, %c0_10, %c0_11] : memref<1x64x128xbf16, #tpu.memory_space<vmem>>, vector<1x64x128xbf16>
    %15 = vector.shape_cast %14 : vector<1x64x128xbf16> to vector<64x128xbf16>
    %16 = vector.shape_cast %13 : vector<64x128xbf16> to vector<1x64x128xbf16>
    tpu.vector_store %arg6[%c0_9, %c0_10, %c0_11], %16 {strides = array<i32>} : memref<1x64x128xbf16, #tpu.memory_space<vmem>>, vector<1x64x128xbf16>,
    %17 = vector.extract_strided_slice %6 {offsets = [0, 256], sizes = [64, 16], strides = [1, 1]} : vector<64x272xf32> to vector<64x16xf32>
    %18 = arith.truncf %17 : vector<64x16xf32> to vector<64x16xbf16>
    %c0_12 = arith.constant 0 : index
    %c0_13 = arith.constant 0 : index
    %c0_14 = arith.constant 0 : index
    %19 = vector.load %arg7[%c0_12, %c0_13, %c0_14] : memref<1x64x16xbf16, #tpu.memory_space<vmem>>, vector<1x64x16xbf16>
    %20 = vector.shape_cast %19 : vector<1x64x16xbf16> to vector<64x16xbf16>
    %21 = vector.shape_cast %18 : vector<64x16xbf16> to vector<1x64x16xbf16>
    tpu.vector_store %arg7[%c0_12, %c0_13, %c0_14], %21 {strides = array<i32>} : memref<1x64x16xbf16, #tpu.memory_space<vmem>>, vector<1x64x16xbf16>,
    return
  }
  func.func @transform_0(%arg0: i32, %arg1: i32) -> (i32, i32, i32) {
    %c0_i32 = arith.constant 0 : i32
    %c0_i32_0 = arith.constant 0 : i32
    return %arg0, %arg1, %c0_i32 : i32, i32, i32
  }
  func.func @transform_1(%arg0: i32, %arg1: i32) -> (i32, i32) {
    %c0_i32 = arith.constant 0 : i32
    %c0_i32_0 = arith.constant 0 : i32
    %c0_i32_1 = arith.constant 0 : i32
    return %c0_i32, %c0_i32_0 : i32, i32
  }
  func.func @transform_2(%arg0: i32, %arg1: i32) -> (i32, i32) {
    %c0_i32 = arith.constant 0 : i32
    %c0_i32_0 = arith.constant 0 : i32
    %c0_i32_1 = arith.constant 0 : i32
    return %c0_i32, %c0_i32_0 : i32, i32
  }
  func.func @transform_3(%arg0: i32, %arg1: i32) -> (i32, i32, i32) {
    %c0_i32 = arith.constant 0 : i32
    %c0_i32_0 = arith.constant 0 : i32
    return %arg0, %arg1, %c0_i32 : i32, i32, i32
  }
  func.func @transform_4(%arg0: i32, %arg1: i32) -> (i32, i32, i32) {
    %c0_i32 = arith.constant 0 : i32
    %c0_i32_0 = arith.constant 0 : i32
    return %arg0, %arg1, %c0_i32 : i32, i32, i32
  }
  func.func @transform_5(%arg0: i32, %arg1: i32) -> (i32, i32, i32) {
    %c0_i32 = arith.constant 0 : i32
    %c0_i32_0 = arith.constant 0 : i32
    return %arg0, %arg1, %c0_i32 : i32, i32, i32
  }
}

</mosaic_0001>

<bundles_post_ra>
// kernel: tpu_custom_call.1
= control target key start
LH: loop header
LB: loop body
LE: loop exit
PB: predicated region body
PF: predicated region fallthrough
CT: control target
= control target key end

     0   :  { %s1255_s0 = inlined_call_operand.vmem [shape: bf16[2,64,16], index: 0, kind: input, shape index: {}]   ;;  %s1256_s1 = inlined_call_operand.vmem [shape: bf16[16,272], index: 1, kind: input, shape index: {}]   ;;  %s1257_s2 = inlined_call_operand.vmem [shape: f32[1,272], index: 2, kind: input, shape index: {}]   ;;  %s1258_s3 = inlined_call_operand.hbm [shape: bf16[2,64,128], index: 3, kind: output, shape index: {0}]   ;;  %s1259_s4 = inlined_call_operand.hbm [shape: bf16[2,64,128], index: 4, kind: output, shape index: {1}]   ;;  %s1260_s5 = inlined_call_operand.vmem [shape: bf16[2,64,16], index: 5, kind: output, shape index: {2}]  }
   0x1   :  { %1261 = sst [smem:[#allocation8_spill]] %s1255_s0 }
   0x2   :  { %11 = vsyncpa [#allocation3], 0 }
   0x3   :  { %13 = vsyncpa [#allocation3 + $0x1], 0 }
   0x4   :  { %14 = vsyncpa [#allocation5], 0 }
   0x5   :  { %16 = vsyncpa [#allocation5 + $0x1], 0  ;;  %s1029_s18 = smov 0   ;;  %s1031_s19 = smov 0  }
   0x6   :  { %s1033_s20 = smov 0   ;;  %s1035_s21 = smov 0  }
   0x7   :  { %s1037_s22 = smov 0   ;;  %s1039_s23 = smov 0  }
   0x8 LB: > { %s704_s24 = sadd.s32 4294967295, %s995_s23   ;;  %s705_s25 = sadd.s32 4294967294, %s995_s23   ;;  %s995_s23 = sphi %s1039_s23, %s22_s23   ;;  %s991_s22 = sphi %s1037_s22, %s1269_s22   ;;  %s987_s21 = sphi %s1035_s21, %s1268_s21   ;;  %s983_s20 = sphi %s1033_s20, %s1267_s20   ;;  %s979_s19 = sphi %s1031_s19, %s1266_s19   ;;  %s975_s18 = sphi %s1029_s18, %s1265_s18  }
   0x9   : > { %s34_s26 = sadd.s32 1, %s991_s22  ;;  %s113_s27 = sadd.s32 1, %s983_s20 }
   0xa   : > { %p36_p0 = scmp.ge.s32.totalorder %s34_s26, 2  ;;  %p123_p1 = scmp.ne.s32.totalorder %s983_s20, %s979_s19 }
   0xb   : > { %p124_p2 = scmp.eq.s32.totalorder %s704_s24, 1  ;;  %p129_p3 = scmp.ne.s32.totalorder %s979_s19, %s975_s18 }
   0xc   : > { %s1271_s26 = smov (%p36_p0, %s34_s26), 0  ;;  %p130_p5 = scmp.eq.s32.totalorder %s705_s25, 1 }
   0xd   : > { %p1069_p4 = por %p124_p2, %p123_p1  ;;  %s108_s29 = ssub.s32 %s991_s22, %s1271_s26 }
   0xe   : > { %p708_p6 = scmp.ge.s32.totalorder %s995_s23, 1  ;;  %p111_p7 = scmp.eq.s32.totalorder %s108_s29, 0 }
   0xf   : > { %p1076_p8 = por %p130_p5, %p129_p3  ;;  %p223_p9 = scmp.lt.s32.totalorder %s995_s23, 3 }
  0x10   : > { %s1082_s6 = scalar_select %p111_p7, %s983_s20, %s113_s27  }
  0x11   : > { %p224_p10 = pnand %p708_p6, %p223_p9 }
  0x12   : > { %p270_p11 = scmp.lt.s32.totalorder (!%p224_p10), %s987_s21, 1  ;;  %s1264_s0 = sld [smem:[#allocation8_spill]] (!%p224_p10) }
  0x13   : > { %227 = sbr.rel (%p224_p10) target bundleno = 220 (0xdc), region = 32  ;;  %s1132_s11 = sand.u32 (!%p224_p10), 1, %s979_s19  }
  0x14   : > { %s709_s12 = sshll.u32 (!%p224_p10), %s1132_s11, 5  ;;  %s772_s24 = sshll.u32 (!%p224_p10), %s987_s21, 5 }
  0x15   : > { %s1151_s16 = scalar_lea.vmem (!%p224_p10), [#allocation2], %s709_s12  ;;  %s1154_s17 = scalar_lea.vmem (!%p224_p10), [#allocation4], %s709_s12 }
  0x16   : > { %s544_s29 = scalar_lea.hbm (!%p224_p10), %s1259_s4, %s772_s24  ;;  %s545_s7 = sshll.u32 (!%p224_p10), %s1154_s17, 4  ;;  %s1188_s7 = int_to_ptr.vmem [resolvable:$true] %s545_s7 }
  0x17   : > { %s1195_s10 = scalar_lea.hbm (!%p224_p10), %s1258_s3, %s772_s24  ;;  %s526_s12 = sshll.u32 (!%p224_p10), %s1151_s16, 4  ;;  %s527_s12 = int_to_ptr.vmem [resolvable:$true] %s526_s12 }
  0x18   : > { %v733_v0 = vld [vmem:[%s1256_s1] sm:$0xf]  ;;  %v770_v1 = vld [vmem:[%s1256_s1 + $0x8] sm:$0xf0]  ;;  %v769_v2 = vld [vmem:[%s1256_s1 + $0x4] sm:$0xf] }
  0x19   : > { %v734_v3 = vor.u32 %v770_v1, %v733_v0  ;;  %v735_v4 = vld [vmem:[%s1256_s1 + $0xc] sm:$0xf0]  ;;  %v741_v5 = vld [vmem:[%s1256_s1 + $0x8] sm:$0xf]  ;;  %v771_v6 = vld [vmem:[%s1256_s1 + $0x10] sm:$0xf0] }
  0x1a   : > { %v738_v7 = vor.u32 %v769_v2, %v735_v4  ;;  %v742_v8 = vor.u32 %v771_v6, %v741_v5  ;;  %s1104_s25 = scalar_select %p270_p11, %s987_s21, 1  ;;  %vm348_vm0 = vcmask 130048   ;;  %v304_v13 = vld [vmem:[%s1257_s2] sm:$0x7]  ;;  %vm488_vm1 = vcmask 125952  }
  0x1b   : > { %368 = vmatpush.bf16.msra.mxu0 %v734_v3  ;;  %820 = vmatpush.bf16.msra.mxu3 %v734_v3  ;;  %v1127_v16 = vperm.slane %v304_v13, 0  ;;  %v1129_v17 = vperm.slane %v304_v13, 2  ;;  %v1134_v18 = vperm.slane %v304_v13, 1  ;;  %s547_s21 = sshll.u32 %s544_s29, 4  ;;  %s528_s13 = sshll.u32 %s1195_s10, 4  ;;  %s548_s21 = int_to_ptr.hbm [resolvable:$true] %s547_s21  ;;  %s529_s13 = int_to_ptr.hbm [resolvable:$true] %s528_s13 }
  0x1c   : > { %821 = vmatpush.bf16.msra.mxu1 %v738_v7  ;;  %822 = vmatpush.bf16.msra.mxu2 %v742_v8  ;;  %s763_s27 = sshll.u32 %s1104_s25, 5  ;;  %s503_s14 = scalar_lea.sflag [#allocation5], %s1132_s11 }
  0x1d   : > { %s277_s8 = scalar_lea.vmem %s1264_s0, %s763_s27  ;;  %s1144_s15 = scalar_lea.vmem %s1260_s5, %s763_s27 }
  0x1e   : > { %v765_v9 = vld [vmem:[%s277_s8] sm:$0xff]  ;;  %v766_v10 = vld [vmem:[%s277_s8 + $0x8] sm:$0xff]  ;;  %v767_v11 = vld [vmem:[%s277_s8 + $0x10] sm:$0xff]  ;;  %s899_s24 = sshra.s32 %s548_s21, 4  ;;  %s900_s24 = int_to_ptr.hbm [resolvable:$true] %s899_s24 }
  0x1f   : > { %397 = vmatpush.bf16.msrb.mxu0 %v738_v7  ;;  %744 = vmatmul.msk.bf16.vlgmr.msra.gmra.mxu3 %vm348_vm0, %v766_v10  ;;  %v768_v12 = vld [vmem:[%s277_s8 + $0x18] sm:$0xff]  ;;  %s901_s25 = scalar_lea.hbm %s900_s24, 32  ;;  %s905_s8 = scalar_lea.hbm %s1259_s4, 64 }
  0x20   : > { %743 = vmatmul.msk.bf16.vlgmr.msra.gmra.mxu0 %vm348_vm0, %v765_v9  ;;  %748 = vmatmul.msk.bf16.vlgmr.msra.gmra.mxu1 %vm348_vm0, %v766_v10  ;;  %p902_p12 = scmp.ne.s32.totalorder %s900_s24, %s901_s25  ;;  %p906_p1 = scmp.lt.s32.totalorder %s900_s24, %s1259_s4 }
  0x21   : > { %752 = vmatmul.msk.bf16.vlgmr.msra.gmra.mxu2 %vm348_vm0, %v766_v10  ;;  %p907_p2 = scmp.lt.s32.totalorder %s905_s8, %s901_s25 }
  0x22   : > { %p903_p13 = pnand %p902_p12, %p1069_p4 }
  0x23   : > { %426 = vmatpush.bf16.msra.mxu0 %v742_v8  ;;  %p908_p3 = por %p907_p2, %p906_p1 }
  0x24   : > { %p904_p0 = pneg %p903_p13 }
  0x26   : > { %p909_p5 = pnand %p908_p3, %p904_p0 }
  0x2f   : > { %745 = vmatmul.msk.bf16.gmra.mxu3 %vm348_vm0, %v767_v11 }
  0x30   : > { %747 = vmatmul.msk.bf16.vlgmr.msrb.gmra.mxu0 %vm348_vm0, %v765_v9  ;;  %749 = vmatmul.msk.bf16.gmra.mxu1 %vm348_vm0, %v767_v11 }
  0x31   : > { %753 = vmatmul.msk.bf16.gmra.mxu2 %vm348_vm0, %v767_v11 }
  0x3f   : > { %746 = vmatmul.msk.bf16.gmra.mxu3 %vm348_vm0, %v768_v12 }
  0x40   : > { %751 = vmatmul.msk.bf16.vlgmr.msra.gmra.mxu0 %vm348_vm0, %v765_v9  ;;  %750 = vmatmul.msk.bf16.gmra.mxu1 %vm348_vm0, %v768_v12 }
  0x41   : > { %754 = vmatmul.msk.bf16.gmra.mxu2 %vm348_vm0, %v768_v12 }
  0x9d   : > { %v370_v14 = vpop.f32.mrf.mxu0  ;;  %v404_v15 = vpop.f32.mrf.mxu1 }
  0x9e   : > { %v371_v20 = vadd.f32 %v370_v14, %v1127_v16  ;;  %v405_v26 = vadd.f32 %v404_v15, %v1134_v18 }
  0xa2   : > { %v375_v19 = vpop.f32.mrf.mxu3 }
  0xa3   : > { %v376_v32 = vadd.f32 %v375_v19, %v1127_v16 }
  0xa4   : > { %v433_v21 = vpop.f32.mrf.mxu2 }
  0xa5   : > { %v434_v22 = vadd.f32 %v433_v21, %v1129_v17  ;;  %v372_v23 = vpop.f32.mrf.mxu0  ;;  %v406_v25 = vpop.f32.mrf.mxu1 }
  0xa6   : > { %v373_v24 = vadd.f32 %v372_v23, %v1127_v16  ;;  %v407_v28 = vadd.f32 %v406_v25, %v1134_v18 }
  0xa7   : > { %v482_v27 = vpack.c.bf16 %v434_v22, %v434_v22 }
  0xa8   : > { %v777_v29 = vpack.c.bf16 %v373_v24, %v371_v20  ;;  %v802_v30 = vpack.c.bf16 %v407_v28, %v405_v26 }
  0xa9   : > { %491 = vst.msk [vmem:[%s1144_s15 + $0x8] sm:$0xf] %vm488_vm1, %v482_v27 }
  0xaa   : > { %778 = vst [vmem:[%s1151_s16] sm:$0xff] %v777_v29   ;;  %v377_v31 = vpop.f32.mrf.mxu3 }
  0xab   : > { %817 = vst [vmem:[%s1154_s17 + $0x8] sm:$0xff] %v802_v30   ;;  %v378_v33 = vadd.f32 %v377_v31, %v1127_v16 }
  0xac   : > { %v435_v34 = vpop.f32.mrf.mxu2 }
  0xad   : > { %v436_v35 = vadd.f32 %v435_v34, %v1129_v17  ;;  %v399_v36 = vpop.f32.mrf.mxu0  ;;  %v782_v37 = vpack.c.bf16 %v378_v33, %v376_v32  ;;  %v409_v38 = vpop.f32.mrf.mxu1 }
  0xae   : > { %v400_v41 = vadd.f32 %v399_v36, %v1134_v18  ;;  %v410_v47 = vadd.f32 %v409_v38, %v1134_v18 }
  0xaf   : > { %v483_v39 = vpack.c.bf16 %v436_v35, %v436_v35  ;;  %814 = vst [vmem:[%s1151_s16 + $0x8] sm:$0xff] %v782_v37  }
  0xb1   : > { %492 = vst.msk [vmem:[%s1144_s15 + $0xc] sm:$0xf] %vm488_vm1, %v483_v39 }
  0xb2   : > { %v380_v40 = vpop.f32.mrf.mxu3 }
  0xb3   : > { %v381_v53 = vadd.f32 %v380_v40, %v1127_v16 }
  0xb4   : > { %v438_v42 = vpop.f32.mrf.mxu2 }
  0xb5   : > { %v439_v43 = vadd.f32 %v438_v42, %v1129_v17  ;;  %v401_v44 = vpop.f32.mrf.mxu0  ;;  %v411_v46 = vpop.f32.mrf.mxu1 }
  0xb6   : > { %v402_v45 = vadd.f32 %v401_v44, %v1134_v18  ;;  %v412_v49 = vadd.f32 %v411_v46, %v1134_v18 }
  0xb7   : > { %v484_v48 = vpack.c.bf16 %v439_v43, %v439_v43 }
  0xb8   : > { %v797_v50 = vpack.c.bf16 %v402_v45, %v400_v41  ;;  %v807_v51 = vpack.c.bf16 %v412_v49, %v410_v47 }
  0xb9   : > { %493 = vst.msk [vmem:[%s1144_s15 + $0x10] sm:$0xf] %vm488_vm1, %v484_v48 }
  0xba   : > { %798 = vst [vmem:[%s1154_s17] sm:$0xff] %v797_v50   ;;  %v382_v52 = vpop.f32.mrf.mxu3 }
  0xbb   : > { %818 = vst [vmem:[%s1154_s17 + $0x10] sm:$0xff] %v807_v51   ;;  %v383_v54 = vadd.f32 %v382_v52, %v1127_v16 }
  0xbc   : > { %v440_v55 = vpop.f32.mrf.mxu2 }
  0xbd   : > { %v441_v56 = vadd.f32 %v440_v55, %v1129_v17  ;;  %v428_v57 = vpop.f32.mrf.mxu0  ;;  %v787_v58 = vpack.c.bf16 %v383_v54, %v381_v53  ;;  %v414_v59 = vpop.f32.mrf.mxu1 }
  0xbe   : > { %v429_v60 = vadd.f32 %v428_v57, %v1129_v17  ;;  %v415_v5 = vadd.f32 %v414_v59, %v1134_v18 }
  0xbf   : > { %v485_v61 = vpack.c.bf16 %v441_v56, %v441_v56  ;;  %815 = vst [vmem:[%s1151_s16 + $0x10] sm:$0xff] %v787_v58  }
  0xc0   : > { %v480_v62 = vpack.c.bf16 %v429_v60, %v429_v60 }
  0xc1   : > { %494 = vst.msk [vmem:[%s1144_s15 + $0x14] sm:$0xf] %vm488_vm1, %v485_v61 }
  0xc2   : > { %489 = vst.msk [vmem:[%s1144_s15] sm:$0xf] %vm488_vm1, %v480_v62  ;;  %v385_v63 = vpop.f32.mrf.mxu3 }
  0xc3   : > { %v386_v11 = vadd.f32 %v385_v63, %v1127_v16 }
  0xc4   : > { %v443_v0 = vpop.f32.mrf.mxu2 }
  0xc5   : > { %v444_v1 = vadd.f32 %v443_v0, %v1129_v17  ;;  %v430_v2 = vpop.f32.mrf.mxu0  ;;  %v416_v3 = vpop.f32.mrf.mxu1 }
  0xc6   : > { %v431_v4 = vadd.f32 %v430_v2, %v1129_v17  ;;  %v417_v7 = vadd.f32 %v416_v3, %v1134_v18 }
  0xc7   : > { %v486_v6 = vpack.c.bf16 %v444_v1, %v444_v1 }
  0xc8   : > { %v481_v8 = vpack.c.bf16 %v431_v4, %v431_v4  ;;  %v812_v9 = vpack.c.bf16 %v417_v7, %v415_v5 }
  0xc9   : > { %495 = vst.msk [vmem:[%s1144_s15 + $0x18] sm:$0xf] %vm488_vm1, %v486_v6 }
  0xca   : > { %490 = vst.msk [vmem:[%s1144_s15 + $0x4] sm:$0xf] %vm488_vm1, %v481_v8  ;;  %v387_v10 = vpop.f32.mrf.mxu3 }
  0xcb   : > { %819 = vst [vmem:[%s1154_s17 + $0x18] sm:$0xff] %v812_v9   ;;  %v388_v12 = vadd.f32 %v387_v10, %v1127_v16 }
  0xcc   : > { %v445_v13 = vpop.f32.mrf.mxu2 }
  0xcd   : > { %912 = shalt.err (!%p909_p5)
}
  0xce   : > { %s997_s10 = smov 64   ;;  %s998_s0 = smov 4   ;;  %v446_v14 = vadd.f32 %v445_v13, %v1129_v17  ;;  %v792_v15 = vpack.c.bf16 %v388_v12, %v386_v11 }
  0xcf   : > { %824 = dma.vmem_to_hbm [thread:$0]  (%p1069_p4), %s1188_s7, 512, %s548_s21, %s503_s14, %s997_s10, %s997_s10, %s998_s0  }
  0xd0   : > { %v487_v16 = vpack.c.bf16 %v446_v14, %v446_v14  ;;  %816 = vst [vmem:[%s1151_s16 + $0x18] sm:$0xff] %v792_v15   ;;  %s498_s24 = scalar_lea.sflag [#allocation3], %s1132_s11  ;;  %s927_s25 = sshra.s32 %s529_s13, 4  ;;  %s928_s25 = int_to_ptr.hbm [resolvable:$true] %s927_s25 }
  0xd1   : > { %s929_s27 = scalar_lea.hbm %s928_s25, 32  ;;  %s933_s7 = scalar_lea.hbm %s1258_s3, 64 }
  0xd2   : > { %496 = vst.msk [vmem:[%s1144_s15 + $0x1c] sm:$0xf] %vm488_vm1, %v487_v16  ;;  %p930_p6 = scmp.ne.s32.totalorder %s928_s25, %s929_s27  ;;  %p934_p10 = scmp.lt.s32.totalorder %s928_s25, %s1258_s3 }
  0xd3   : > { %p935_p11 = scmp.lt.s32.totalorder %s933_s7, %s929_s27 }
  0xd4   : > { %p931_p7 = pnand %p930_p6, %p1069_p4 }
  0xd5   : > { %p936_p12 = por %p935_p11, %p934_p10 }
  0xd6   : > { %p932_p9 = pneg %p931_p7 }
  0xd8   : > { %p937_p13 = pnand %p936_p12, %p932_p9 }
  0xda   : > { %940 = shalt.err (!%p937_p13)
}
  0xdb   : > { %823 = dma.vmem_to_hbm [thread:$0]  (%p1069_p4), %s527_s12, 512, %s529_s13, %s498_s24, %s997_s10, %s997_s10, %s998_s0  }
  0xdc PF: > { %p834_p0 = scmp.ge.s32.totalorder %s995_s23, 2  ;;  %s566_s11 = sand.u32 1, %s975_s18  }
  0xdd   : > { %s567_s15 = scalar_lea.sflag [#allocation3], %s566_s11 }
  0xde   : > { %p828_p1 = pnand %p834_p0, %p1076_p8 }
  0xe0   : > { %p829_p2 = pneg %p828_p1 }
  0xe2   : > { %966 = dma.done.wait (%p829_p2), %s567_s15, 512  }
  0xe3   : > { %968 = vsyncadd (%p829_p2), %s567_s15, 4294966784  ;;  %s577_s16 = scalar_lea.sflag [#allocation5], %s566_s11 }
  0xe4   : > { %970 = dma.done.wait (%p829_p2), %s577_s16, 512  }
  0xe5   : > { %972 = vsyncadd (%p829_p2), %s577_s16, 4294966784  ;;  %s22_s23 = sadd.s32 1, %s995_s23   ;;  %s1265_s18 = smov %s979_s19 }
  0xe6   : > { %p19_p3 = scmp.ge.s32.totalorder %s22_s23, 4   ;;  %s1266_s19 = smov %s983_s20 }
  0xe7   : > { %s1267_s20 = smov %s1082_s6  ;;  %s1268_s21 = smov %s991_s22 }
  0xe8   : > { %s1269_s22 = smov %s1271_s26  ;;  %21 = sbr.rel (!%p19_p3) target bundleno = 8 (0x8), region = 96 }
  0xed   :  { %595 = vsyncpa [#allocation3], 1 }
  0xee   :  { %597 = vsyncpa [#allocation3 + $0x1], 1 }
  0xef   :  { %598 = vsyncpa [#allocation5], 1 }
  0xf0   :  { %600 = vsyncpa [#allocation5 + $0x1], 1 }

</bundles_post_ra>
